<compile_context>
chip_gen: v5e
topology: v5e:2x2
jax: 0.10.0
libtpu: 0.0.40
codegen_flags: <defaults>
</compile_context>

<pallas_src>
import jax
import jax.numpy as jnp
import numpy as np
from jax.experimental import pallas as pl
from jax.experimental.pallas import tpu as pltpu


# ----------------------------------------------------------------------------- constants

_LANE = 128
_MAX_BLOCK_BYTES = 4 * 1024 * 1024        # 4 MiB/block -> ~16 MiB double-buffered in+out
_VMEM_LIMIT_BYTES = 32 * 1024 * 1024      # <= physical VMEM on v5e/v6e/v7x
_LANE_CANDIDATES = (8192, 4096, 2048, 1024, 512, 256, 128)


# ----------------------------------------------------------------------------- kernel

def _flatten_copy_kernel(x_ref, o_ref):
    # Pure lane-dense block copy; all layout work is done by the BlockSpecs.
    o_ref[...] = x_ref[...]


# ----------------------------------------------------------------------------- tiling helpers

def _sublane_multiple(dtype) -> int:
    # Minimal packed sublane tile per dtype (f32:8, bf16/f16:16, int8/fp8:32).
    return {4: 8, 2: 16, 1: 32}.get(jnp.dtype(dtype).itemsize, 8)


def _pick_lane_width(total: int):
    """Largest lane-dense width (multiple of 128) dividing `total`, else None."""
    for cand in _LANE_CANDIDATES:
        if total % cand == 0:
            return cand
    return None


def _pick_rows_block(rows: int, row_width: int, sub: int, itemsize: int) -> int:
    """Block length along the rows (second-to-last) axis.

    Either the full dim (always legal) or a multiple of the dtype sublane tile,
    capped by the per-block VMEM budget, keeping >=2 grid steps when there is
    enough work so both TensorCores on v7x get a share.
    """
    if rows <= sub:
        return rows                                        # full dim: legal for any dtype
    budget = max(sub, (_MAX_BLOCK_BYTES // (row_width * itemsize)) // sub * sub)
    bn = min(budget, max(sub, (rows // sub) * sub))        # multiple of sub, <= rows
    if rows >= 2 * sub and pl.cdiv(rows, bn) < 2:
        bn = max(sub, (rows // 2) // sub * sub)            # ensure >=2 parallel steps
    return bn


# ----------------------------------------------------------------------------- wrapper

@jax.jit
def flatten_forward(x):
    """Flatten.forward: x (N, ...) -> (N, prod(rest)); same element order as torch .view."""
    N = x.shape[0]
    K = int(np.prod(x.shape[1:])) if x.ndim > 1 else 1
    dtype = x.dtype
    itemsize = jnp.dtype(dtype).itemsize
    total = N * K
    sub = _sublane_multiple(dtype)

    cost = pl.CostEstimate(flops=0, transcendentals=0,
                           bytes_accessed=2 * total * itemsize)

    L = _pick_lane_width(total)
    if L is not None:
        # Contiguous-slab path: view the whole tensor as (rows, L). Each (bn, L)
        # block is one linear HBM segment -> single DMA per block, full-width
        # unmasked stores, independent of awkward N / K factorizations.
        rows = total // L
        x_flat = jnp.reshape(x, (rows, L))                 # zero-cost row-major view
        bn = _pick_rows_block(rows, L, sub, itemsize)
        out = pl.pallas_call(
            _flatten_copy_kernel,
            out_shape=jax.ShapeDtypeStruct((rows, L), dtype),
            grid=(pl.cdiv(rows, bn),),
            in_specs=[pl.BlockSpec((bn, L), lambda i: (i, 0))],
            out_specs=pl.BlockSpec((bn, L), lambda i: (i, 0)),
            compiler_params=pltpu.CompilerParams(
                dimension_semantics=("parallel",),
                vmem_limit_bytes=_VMEM_LIMIT_BYTES),
            cost_estimate=cost,
        )(x_flat)
        return jnp.reshape(out, (N, K))

    # Fallback: total (hence K) is not a multiple of 128. Tile the (N, K) view
    # directly; edge blocks are masked automatically by the cdiv grid.
    x2 = jnp.reshape(x, (N, K))
    if K < _LANE or K * sub * itemsize <= _MAX_BLOCK_BYTES:
        bk = K                                              # full rows: contiguous per-block DMA
    else:
        bk = max(_LANE, (_MAX_BLOCK_BYTES // (sub * itemsize)) // _LANE * _LANE)
    bn = _pick_rows_block(N, bk, sub, itemsize)
    return pl.pallas_call(
        _flatten_copy_kernel,
        out_shape=jax.ShapeDtypeStruct((N, K), dtype),
        grid=(pl.cdiv(N, bn), pl.cdiv(K, bk)),
        in_specs=[pl.BlockSpec((bn, bk), lambda i, j: (i, j))],
        out_specs=pl.BlockSpec((bn, bk), lambda i, j: (i, j)),
        compiler_params=pltpu.CompilerParams(
            dimension_semantics=("parallel", "parallel"),
            vmem_limit_bytes=_VMEM_LIMIT_BYTES),
        cost_estimate=cost,
    )(x2)


# ----------------------------------------------------------------------------- main

if __name__ == "__main__":
    key = jax.random.PRNGKey(0)

    # Primary shape implied by the module's use (conv features before an FC head).
    x = jax.random.normal(key, (2, 4, 16, 16), jnp.float32)
    out = jax.block_until_ready(flatten_forward(x))
    ref = jnp.reshape(x, (2, 4 * 16 * 16))                  # pure-JAX reference of torch .view
    assert out.shape == ref.shape, out.shape
    assert bool(jnp.array_equal(out, ref))

    # Awkward shape: N not a multiple of 8, K not a multiple of 128 -> exercises
    # the masked-edge fallback path that previously violated the (8,128) rule.
    x2 = jax.random.normal(key, (12, 3, 5, 7), jnp.float32)
    out2 = jax.block_until_ready(flatten_forward(x2))
    ref2 = jnp.reshape(x2, (12, 3 * 5 * 7))
    assert out2.shape == ref2.shape, out2.shape
    assert bool(jnp.array_equal(out2, ref2))

    # bf16 input -> exercises the dtype-aware sublane tiling on the slab path.
    x3 = jax.random.normal(key, (32, 8, 16, 16), jnp.bfloat16)
    out3 = jax.block_until_ready(flatten_forward(x3))
    ref3 = jnp.reshape(x3, (32, 8 * 16 * 16))
    assert out3.shape == ref3.shape, out3.shape
    assert bool(jnp.array_equal(out3, ref3))

    print("KERNEL_OK")
</pallas_src>

<mosaic_0001>
module attributes {stable_mosaic.version = 11 : i64} {
  func.func @_flatten_copy_kernel(%arg0: i32, %arg1: memref<1x2048xf32, #tpu.memory_space<vmem>>, %arg2: memref<1x2048xf32, #tpu.memory_space<vmem>>) attributes {dimension_semantics = [#tpu.dimension_semantics<parallel>], iteration_bounds = array<i64: 1>, scalar_prefetch = 0 : i64, scratch_operands = 0 : i64, tpu.core_type = #tpu.core_type<tc>, window_params = [{transform_indices = @transform_0, window_bounds = array<i64: 1, 2048>}, {transform_indices = @transform_1, window_bounds = array<i64: 1, 2048>}]} {
    %c0 = arith.constant 0 : index
    %c0_0 = arith.constant 0 : index
    %0 = vector.load %arg1[%c0, %c0_0] : memref<1x2048xf32, #tpu.memory_space<vmem>>, vector<1x2048xf32>
    %c0_1 = arith.constant 0 : index
    %c0_2 = arith.constant 0 : index
    %1 = vector.load %arg2[%c0_1, %c0_2] : memref<1x2048xf32, #tpu.memory_space<vmem>>, vector<1x2048xf32>
    tpu.vector_store %arg2[%c0_1, %c0_2], %0 {strides = array<i32>} : memref<1x2048xf32, #tpu.memory_space<vmem>>, vector<1x2048xf32>,
    return
  }
  func.func @transform_0(%arg0: i32) -> (i32, i32) {
    %c0_i32 = arith.constant 0 : i32
    %c0_i32_0 = arith.constant 0 : i32
    return %arg0, %c0_i32 : i32, i32
  }
  func.func @transform_1(%arg0: i32) -> (i32, i32) {
    %c0_i32 = arith.constant 0 : i32
    %c0_i32_0 = arith.constant 0 : i32
    return %arg0, %c0_i32 : i32, i32
  }
}

</mosaic_0001>

<bundles_post_ra>
// kernel: flatten_forward.1
= control target key start
LH: loop header
LB: loop body
LE: loop exit
PB: predicated region body
PF: predicated region fallthrough
CT: control target
= control target key end

     0   :  { %s38_s0 = inlined_call_operand.vmem [shape: f32[1,2048], index: 0, kind: input, shape index: {}]   ;;  %s39_s1 = inlined_call_operand.vmem [shape: f32[1,2048], index: 1, kind: output, shape index: {}]  }
   0x1   :  { %v8_v0 = vld [vmem:[%s38_s0] sm:$0xff]  ;;  %v9_v1 = vld [vmem:[%s38_s0 + $0x8] sm:$0xff] }
   0x2   :  { %10 = vst [vmem:[%s39_s1] sm:$0xff] %v8_v0 }
   0x3   :  { %11 = vst [vmem:[%s39_s1 + $0x8] sm:$0xff] %v9_v1 }

</bundles_post_ra>
